<compile_context>
chip_gen: v5e
topology: v5e:2x2
jax: 0.10.0
libtpu: 0.0.40
codegen_flags: <defaults>
</compile_context>

<pallas_src>
import jax
import jax.numpy as jnp
from jax import lax
from jax.experimental import pallas as pl
from jax.experimental.pallas import tpu as pltpu


def _round_up(a, b):
    return ((a + b - 1) // b) * b


def _sublane_multiple(dtype):
    # Minimum second-minor multiple per dtype packing: f32->8, bf16->16, int8->32.
    return 8 * (4 // jnp.dtype(dtype).itemsize)


def _device_kind():
    try:
        return jax.devices()[0].device_kind.lower()
    except Exception:
        return ""


def _pick_tk(K, tk_cap):
    Kr = _round_up(K, 128)
    if Kr <= tk_cap:
        return Kr
    # Prefer a 128-multiple divisor of K so no K padding (extra HBM copy) is needed.
    for cand in range(tk_cap, 127, -128):
        if K % cand == 0:
            return cand
    return tk_cap


# Contract x(tm, tk) with w(tn, tk) over both last dims -> (tm, tn).
_DN = (((1,), (1,)), ((), ()))


# ---------------------------------------------------------------------------
# Fast path: whole (tiny) problem in VMEM -> one gridless MXU pass.
# ---------------------------------------------------------------------------
def _fused_kernel(x_ref, w_ref, b_ref, o_ref):
    acc = lax.dot_general(x_ref[...], w_ref[...], dimension_numbers=_DN,
                          preferred_element_type=jnp.float32)
    o_ref[...] = (acc + b_ref[...]).astype(o_ref.dtype)


# ---------------------------------------------------------------------------
# Tiled path, f32 output: accumulate directly into the resident output block.
# ---------------------------------------------------------------------------
def _tiled_kernel_f32(x_ref, w_ref, b_ref, o_ref):
    k = pl.program_id(2)

    @pl.when(k == 0)
    def _():
        o_ref[...] = jnp.zeros_like(o_ref)

    o_ref[...] += lax.dot_general(x_ref[...], w_ref[...], dimension_numbers=_DN,
                                  preferred_element_type=jnp.float32)

    @pl.when(k == pl.num_programs(2) - 1)
    def _():
        o_ref[...] += b_ref[...]


# ---------------------------------------------------------------------------
# Tiled path, narrow output (e.g. bf16): f32 accumulator scratch, cast once.
# ---------------------------------------------------------------------------
def _tiled_kernel_acc(x_ref, w_ref, b_ref, o_ref, acc_ref):
    k = pl.program_id(2)

    @pl.when(k == 0)
    def _():
        acc_ref[...] = jnp.zeros_like(acc_ref)

    acc_ref[...] += lax.dot_general(x_ref[...], w_ref[...], dimension_numbers=_DN,
                                    preferred_element_type=jnp.float32)

    @pl.when(k == pl.num_programs(2) - 1)
    def _():
        o_ref[...] = (acc_ref[...] + b_ref[...]).astype(o_ref.dtype)


def custom_linear(x, weight, bias, *, tm=None, tn=None, tk=None,
                  force_tiled=False):
    """y = x @ weight.T + bias.  weight is (output_size, input_size), exactly as
    the PyTorch parameter -- it is never transposed or copied in HBM."""
    M, K = x.shape
    N, Kw = weight.shape
    assert K == Kw, "weight must be (output_size, input_size)"

    b2 = bias.reshape(1, N)

    x_is = jnp.dtype(x.dtype).itemsize
    w_is = jnp.dtype(weight.dtype).itemsize
    b_is = jnp.dtype(bias.dtype).itemsize
    o_is = jnp.dtype(x.dtype).itemsize

    cost = pl.CostEstimate(
        flops=2 * M * N * K,
        transcendentals=0,
        bytes_accessed=int(x_is * M * K + w_is * K * N + b_is * N + o_is * M * N),
    )

    # ---- gridless fast path: only for truly tiny / latency-bound shapes ------
    total_vmem = x_is * M * K + w_is * K * N + b_is * N + o_is * M * N + 4 * M * N
    if not force_tiled and total_vmem <= (2 << 20):
        return pl.pallas_call(
            _fused_kernel,
            out_shape=jax.ShapeDtypeStruct((M, N), x.dtype),
            in_specs=[pl.BlockSpec(memory_space=pltpu.MemorySpace.VMEM)] * 3,
            out_specs=pl.BlockSpec(memory_space=pltpu.MemorySpace.VMEM),
            cost_estimate=cost,
        )(x, weight, b2)

    # ---- general tiled path ---------------------------------------------------
    kind = _device_kind()
    sub = _sublane_multiple(x.dtype)
    if "v6" in kind or "trillium" in kind:
        # v6e: 32 MiB default scoped / 128 MiB physical VMEM -> bigger tiles.
        tm_cap, tn_cap, tk_cap, budget = 512, 1024, 1024, 24 << 20
    elif "v5 lite" in kind or "v5lite" in kind or "v5e" in kind:
        # v5e: 16 MiB default scoped VMEM -> keep the working set small.
        tm_cap, tn_cap, tk_cap, budget = 256, 512, 512, 12 << 20
    else:
        # v7x (64 MiB physical / 2 TCs) & unknown: conservative.
        tm_cap, tn_cap, tk_cap, budget = 256, 512, 1024, 16 << 20

    # Clamp / round user tiles to legal (sublane, 128) multiples.
    tm = (min(tm_cap, _round_up(M, sub)) if tm is None
          else min(_round_up(max(tm, 1), sub), _round_up(M, sub)))
    tn = (min(tn_cap, _round_up(N, 128)) if tn is None
          else min(_round_up(max(tn, 1), 128), _round_up(N, 128)))
    tk = (_pick_tk(K, tk_cap) if tk is None
          else min(_round_up(max(tk, 1), 128), _round_up(K, 128)))

    # v7x has two TensorCores: make sure the "parallel" (i, j) grid has >= 2 blocks.
    if "v7" in kind and pl.cdiv(M, tm) * pl.cdiv(N, tn) < 2 and N > 128:
        tn = max(128, _round_up(pl.cdiv(N, 2), 128))

    out_is_f32 = jnp.dtype(x.dtype) == jnp.float32

    def _footprint(tm_, tn_, tk_):
        fp = 2 * (tm_ * tk_ * x_is + tk_ * tn_ * w_is + tn_ * b_is + tm_ * tn_ * o_is)
        if not out_is_f32:
            fp += tm_ * tn_ * 4
        return fp

    # Shrink until the double-buffered working set fits the generation budget.
    while _footprint(tm, tn, tk) > budget:
        if tk > 128:
            tk = max(128, _round_up(tk // 2, 128))
        elif tn > 128:
            tn = max(128, _round_up(tn // 2, 128))
        elif tm > sub:
            tm = max(sub, _round_up(tm // 2, sub))
        else:
            break

    # Pad ONLY along K (K-tail garbage would corrupt valid outputs; M/N tails
    # just land in rows/cols that are never read back).
    Kp = _round_up(K, tk)
    x_p = jnp.pad(x, ((0, 0), (0, Kp - K))) if Kp != K else x
    w_p = jnp.pad(weight, ((0, 0), (0, Kp - K))) if Kp != K else weight

    kernel = _tiled_kernel_f32 if out_is_f32 else _tiled_kernel_acc
    scratch = [] if out_is_f32 else [pltpu.VMEM((tm, tn), jnp.float32)]

    grid = (pl.cdiv(M, tm), pl.cdiv(N, tn), Kp // tk)

    return pl.pallas_call(
        kernel,
        out_shape=jax.ShapeDtypeStruct((M, N), x.dtype),
        grid_spec=pltpu.PrefetchScalarGridSpec(
            num_scalar_prefetch=0,
            grid=grid,
            in_specs=[
                pl.BlockSpec((tm, tk), lambda i, j, k: (i, k)),   # x        (M, Kp)
                pl.BlockSpec((tn, tk), lambda i, j, k: (j, k)),   # weight   (N, Kp)
                pl.BlockSpec((1, tn), lambda i, j, k: (0, j)),    # bias     (1, N)
            ],
            out_specs=pl.BlockSpec((tm, tn), lambda i, j, k: (i, j)),
            scratch_shapes=scratch,
        ),
        compiler_params=pltpu.CompilerParams(
            dimension_semantics=("parallel", "parallel", "arbitrary"),
            vmem_limit_bytes=int(min(budget + (8 << 20), 48 << 20)),
        ),
        cost_estimate=cost,
    )(x_p, w_p, b2)


if __name__ == "__main__":
    # --- 1. Module-consistent small shapes: batch=16, input=256, output=128 ---
    M, K, N = 16, 256, 128
    key = jax.random.PRNGKey(0)
    kx, kw = jax.random.split(key)

    x = jax.random.normal(kx, (M, K), dtype=jnp.float32)
    weight = 0.02 * jax.random.normal(kw, (N, K), dtype=jnp.float32)  # (out, in)
    bias = jnp.zeros((N,), dtype=jnp.float32)

    y = custom_linear(x, weight, bias)                 # gridless fast path
    jax.block_until_ready(y)
    y_ref = x @ weight.T + bias
    assert y.shape == (M, N)
    assert jnp.allclose(y, y_ref, atol=1e-4, rtol=1e-4)

    # --- 2. Tiled f32 path: non-128-divisible N (masked edge), multi-step K ---
    M2, K2, N2 = 48, 384, 300
    kx2, kw2, kb2 = jax.random.split(jax.random.PRNGKey(1), 3)
    x2 = jax.random.normal(kx2, (M2, K2), dtype=jnp.float32)
    w2 = 0.02 * jax.random.normal(kw2, (N2, K2), dtype=jnp.float32)
    b2 = 0.02 * jax.random.normal(kb2, (N2,), dtype=jnp.float32)
    y2 = custom_linear(x2, w2, b2, tm=16, tn=128, tk=128, force_tiled=True)
    jax.block_until_ready(y2)
    y2_ref = x2 @ w2.T + b2
    assert y2.shape == (M2, N2)
    assert jnp.allclose(y2, y2_ref, atol=1e-4, rtol=1e-4)

    # --- 3. Tiled bf16 path: f32 accumulator scratch + K-only padding (K=200) -
    M3, K3, N3 = 32, 200, 160
    kx3, kw3, kb3 = jax.random.split(jax.random.PRNGKey(2), 3)
    x3 = jax.random.normal(kx3, (M3, K3), dtype=jnp.float32).astype(jnp.bfloat16)
    w3 = (0.02 * jax.random.normal(kw3, (N3, K3), dtype=jnp.float32)).astype(jnp.bfloat16)
    b3 = (0.02 * jax.random.normal(kb3, (N3,), dtype=jnp.float32)).astype(jnp.bfloat16)
    y3 = custom_linear(x3, w3, b3, tm=16, tn=128, tk=128, force_tiled=True)
    jax.block_until_ready(y3)
    y3_ref = (x3.astype(jnp.float32) @ w3.astype(jnp.float32).T
              + b3.astype(jnp.float32))
    assert y3.shape == (M3, N3)
    assert jnp.allclose(y3.astype(jnp.float32), y3_ref, atol=2e-2, rtol=2e-2)

    print("KERNEL_OK")
</pallas_src>

<mosaic_0001>
module attributes {stable_mosaic.version = 11 : i64} {
  func.func @_fused_kernel(%arg0: memref<16x256xf32, #tpu.memory_space<vmem>>, %arg1: memref<128x256xf32, #tpu.memory_space<vmem>>, %arg2: memref<1x128xf32, #tpu.memory_space<vmem>>, %arg3: memref<16x128xf32, #tpu.memory_space<vmem>>) attributes {dimension_semantics = [], scalar_prefetch = 0 : i64, scratch_operands = 0 : i64, tpu.core_type = #tpu.core_type<tc>} {
    %c0 = arith.constant 0 : index
    %c0_0 = arith.constant 0 : index
    %0 = vector.load %arg0[%c0, %c0_0] : memref<16x256xf32, #tpu.memory_space<vmem>>, vector<16x256xf32>
    %c0_1 = arith.constant 0 : index
    %c0_2 = arith.constant 0 : index
    %1 = vector.load %arg1[%c0_1, %c0_2] : memref<128x256xf32, #tpu.memory_space<vmem>>, vector<128x256xf32>
    %cst = arith.constant dense<0.000000e+00> : vector<16x128xf32>
    %2 = tpu.matmul %0, %1, %cst {dimension_numbers = #tpu.dot_dimension_numbers<[1], [1], [0], [0], [0, 0, 1, 0], [], []>} : vector<16x256xf32>, vector<128x256xf32>, vector<16x128xf32> -> vector<16x128xf32>
    %c0_3 = arith.constant 0 : index
    %c0_4 = arith.constant 0 : index
    %3 = vector.load %arg2[%c0_3, %c0_4] : memref<1x128xf32, #tpu.memory_space<vmem>>, vector<1x128xf32>
    %4 = vector.broadcast %3 : vector<1x128xf32> to vector<16x128xf32>
    %5 = arith.addf %2, %4 : vector<16x128xf32>
    %c0_5 = arith.constant 0 : index
    %c0_6 = arith.constant 0 : index
    %6 = vector.load %arg3[%c0_5, %c0_6] : memref<16x128xf32, #tpu.memory_space<vmem>>, vector<16x128xf32>
    tpu.vector_store %arg3[%c0_5, %c0_6], %5 {strides = array<i32>} : memref<16x128xf32, #tpu.memory_space<vmem>>, vector<16x128xf32>,
    return
  }
}

</mosaic_0001>

<bundles_post_ra>
// kernel: tpu_custom_call.1
= control target key start
LH: loop header
LB: loop body
LE: loop exit
PB: predicated region body
PF: predicated region fallthrough
CT: control target
= control target key end

     0   :  { %8 = vsyncpa [#allocation3], 0  ;;  %s312_s0 = inlined_call_operand.hbm [shape: f32[16,256], index: 0, kind: input, shape index: {}]   ;;  %s313_s1 = inlined_call_operand.hbm [shape: f32[128,256], index: 1, kind: input, shape index: {}]   ;;  %s314_s2 = inlined_call_operand.vmem [shape: f32[1,128], index: 2, kind: input, shape index: {}]   ;;  %s315_s3 = inlined_call_operand.hbm [shape: f32[16,128], index: 3, kind: output, shape index: {}]  }
   0x1   :  { %9 = vsyncpa [#allocation6], 0 }
   0x2   :  { %10 = vsyncpa [#allocation4], 0  ;;  %s15_s14 = sshll.u32 %s312_s0, 4  ;;  %s273_s15 = smov [#allocation2]   ;;  %s16_s14 = int_to_ptr.hbm [resolvable:$true] %s15_s14 }
   0x3   :  { %s17_s16 = sshll.u32 %s273_s15, 4  ;;  %s28_s19 = sshll.u32 %s313_s1, 4  ;;  %s18_s16 = int_to_ptr.vmem [resolvable:$true] %s17_s16  ;;  %s29_s19 = int_to_ptr.hbm [resolvable:$true] %s28_s19 }
   0x4   :  { %s274_s20 = smov 256   ;;  %s275_s21 = smov 16  }
   0x5   :  { %23 = dma.hbm_to_vmem [thread:$0]  %s16_s14, 512, %s18_s16, [#allocation3], %s274_s20, %s274_s20, %s275_s21  }
   0x6   :  { %s276_s22 = smov [#allocation5]  }
   0x7   :  { %s30_s23 = sshll.u32 %s276_s22, 4  ;;  %s31_s23 = int_to_ptr.vmem [resolvable:$true] %s30_s23 }
   0x8   :  { %36 = dma.hbm_to_vmem [thread:$0]  %s29_s19, 4096, %s31_s23, [#allocation6], %s274_s20, %s274_s20, %s275_s21  }
   0x9   :  { %267 = dma.done.wait [#allocation3], 512  }
   0xa   :  { %268 = vsyncadd [#allocation3], 4294966784 }
   0xb   :  { %269 = dma.done.wait [#allocation6], 4096  }
   0xc   :  { %270 = vsyncadd [#allocation6], 4294963200  ;;  %v81_v0 = vld [vmem:[#allocation5 + $0xf0] sm:$0xff]  ;;  %v82_v1 = vld [vmem:[#allocation5 + $0xf8] sm:$0xff]  ;;  %s277_s24 = smov [#allocation7]   ;;  %s141_s28 = sshll.u32 %s315_s3, 4  ;;  %s142_s28 = int_to_ptr.hbm [resolvable:$true] %s141_s28 }
   0xd   :  { %155 = vmatpush.xpose.msra.mxu2 %v81_v0  ;;  %171 = vmatpush.xpose.msra.mxu3 %v82_v1  ;;  %v79_v2 = vld [vmem:[#allocation5 + $0xe0] sm:$0xff]  ;;  %v80_v3 = vld [vmem:[#allocation5 + $0xe8] sm:$0xff]  ;;  %v77_v4 = vld [vmem:[#allocation5 + $0xd0] sm:$0xff]  ;;  %s139_s25 = sshll.u32 %s277_s24, 4  ;;  %s278_s29 = smov 128   ;;  %s140_s25 = int_to_ptr.vmem [resolvable:$true] %s139_s25 }
   0xe   :  { %87 = vmatpush.xpose.msra.mxu0 %v81_v0  ;;  %110 = vmatpush.xpose.msra.mxu1 %v82_v1  ;;  %v78_v5 = vld [vmem:[#allocation5 + $0xd8] sm:$0xff]  ;;  %v75_v6 = vld [vmem:[#allocation5 + $0xc0] sm:$0xff]  ;;  %v76_v7 = vld [vmem:[#allocation5 + $0xc8] sm:$0xff] }
   0xf   :  { %v73_v8 = vld [vmem:[#allocation5 + $0xb0] sm:$0xff]  ;;  %v74_v9 = vld [vmem:[#allocation5 + $0xb8] sm:$0xff]  ;;  %v71_v10 = vld [vmem:[#allocation5 + $0xa0] sm:$0xff] }
  0x10   :  { %v72_v11 = vld [vmem:[#allocation5 + $0xa8] sm:$0xff]  ;;  %v69_v12 = vld [vmem:[#allocation5 + $0x90] sm:$0xff]  ;;  %v70_v13 = vld [vmem:[#allocation5 + $0x98] sm:$0xff] }
  0x11   :  { %156 = vmatpush.xpose.msra.mxu2 %v79_v2  ;;  %172 = vmatpush.xpose.msra.mxu3 %v80_v3  ;;  %v67_v14 = vld [vmem:[#allocation5 + $0x80] sm:$0xff]  ;;  %v68_v15 = vld [vmem:[#allocation5 + $0x88] sm:$0xff]  ;;  %v65_v16 = vld [vmem:[#allocation5 + $0x70] sm:$0xff] }
  0x12   :  { %88 = vmatpush.xpose.msra.mxu0 %v79_v2  ;;  %111 = vmatpush.xpose.msra.mxu1 %v80_v3  ;;  %v66_v17 = vld [vmem:[#allocation5 + $0x78] sm:$0xff]  ;;  %v63_v18 = vld [vmem:[#allocation5 + $0x60] sm:$0xff]  ;;  %v64_v19 = vld [vmem:[#allocation5 + $0x68] sm:$0xff] }
  0x13   :  { %v61_v20 = vld [vmem:[#allocation5 + $0x50] sm:$0xff]  ;;  %v62_v21 = vld [vmem:[#allocation5 + $0x58] sm:$0xff]  ;;  %v59_v22 = vld [vmem:[#allocation5 + $0x40] sm:$0xff] }
  0x14   :  { %v60_v23 = vld [vmem:[#allocation5 + $0x48] sm:$0xff]  ;;  %v57_v24 = vld [vmem:[#allocation5 + $0x30] sm:$0xff]  ;;  %v58_v25 = vld [vmem:[#allocation5 + $0x38] sm:$0xff] }
  0x15   :  { %157 = vmatpush.xpose.msra.mxu2 %v77_v4  ;;  %173 = vmatpush.xpose.msra.mxu3 %v78_v5  ;;  %v55_v26 = vld [vmem:[#allocation5 + $0x20] sm:$0xff]  ;;  %v56_v27 = vld [vmem:[#allocation5 + $0x28] sm:$0xff]  ;;  %v53_v28 = vld [vmem:[#allocation5 + $0x10] sm:$0xff] }
  0x16   :  { %89 = vmatpush.xpose.msra.mxu0 %v77_v4  ;;  %112 = vmatpush.xpose.msra.mxu1 %v78_v5  ;;  %v54_v29 = vld [vmem:[#allocation5 + $0x18] sm:$0xff]  ;;  %v51_v30 = vld [vmem:[#allocation5] sm:$0xff]  ;;  %v52_v31 = vld [vmem:[#allocation5 + $0x8] sm:$0xff] }
  0x17   :  { %v49_v32 = vld [vmem:[#allocation2 + $0x10] sm:$0xff]  ;;  %v50_v33 = vld [vmem:[#allocation2 + $0x18] sm:$0xff]  ;;  %v47_v34 = vld [vmem:[#allocation2] sm:$0xff] }
  0x18   :  { %v48_v35 = vld [vmem:[#allocation2 + $0x8] sm:$0xff]  ;;  %v194_v36 = vld [vmem:[%s314_s2] ss:$0 sm:$0xff]  ;;  %s279_s2 = smov 8  }
  0x19   :  { %158 = vmatpush.xpose.msra.mxu2 %v75_v6  ;;  %174 = vmatpush.xpose.msra.mxu3 %v76_v7 }
  0x1a   :  { %90 = vmatpush.xpose.msra.mxu0 %v75_v6  ;;  %113 = vmatpush.xpose.msra.mxu1 %v76_v7 }
  0x1d   :  { %159 = vmatpush.xpose.msra.mxu2 %v73_v8  ;;  %175 = vmatpush.xpose.msra.mxu3 %v74_v9 }
  0x1e   :  { %91 = vmatpush.xpose.msra.mxu0 %v73_v8  ;;  %114 = vmatpush.xpose.msra.mxu1 %v74_v9 }
  0x21   :  { %160 = vmatpush.xpose.msra.mxu2 %v71_v10  ;;  %176 = vmatpush.xpose.msra.mxu3 %v72_v11 }
  0x22   :  { %92 = vmatpush.xpose.msra.mxu0 %v71_v10  ;;  %115 = vmatpush.xpose.msra.mxu1 %v72_v11 }
  0x25   :  { %161 = vmatpush.xpose.msra.mxu2 %v69_v12  ;;  %177 = vmatpush.xpose.msra.mxu3 %v70_v13 }
  0x26   :  { %93 = vmatpush.xpose.msra.mxu0 %v69_v12  ;;  %116 = vmatpush.xpose.msra.mxu1 %v70_v13 }
  0x29   :  { %162 = vmatpush.xpose.msra.mxu2 %v67_v14  ;;  %178 = vmatpush.xpose.msra.mxu3 %v68_v15 }
  0x2a   :  { %94 = vmatpush.xpose.msra.mxu0 %v67_v14  ;;  %117 = vmatpush.xpose.msra.mxu1 %v68_v15 }
  0x2d   :  { %163 = vmatpush.xpose.msra.mxu2 %v65_v16  ;;  %179 = vmatpush.xpose.msra.mxu3 %v66_v17 }
  0x2e   :  { %95 = vmatpush.xpose.msra.mxu0 %v65_v16  ;;  %118 = vmatpush.xpose.msra.mxu1 %v66_v17 }
  0x31   :  { %164 = vmatpush.xpose.msra.mxu2 %v63_v18  ;;  %180 = vmatpush.xpose.msra.mxu3 %v64_v19 }
  0x32   :  { %96 = vmatpush.xpose.msra.mxu0 %v63_v18  ;;  %119 = vmatpush.xpose.msra.mxu1 %v64_v19 }
  0x35   :  { %165 = vmatpush.xpose.msra.mxu2 %v61_v20  ;;  %181 = vmatpush.xpose.msra.mxu3 %v62_v21 }
  0x36   :  { %97 = vmatpush.xpose.msra.mxu0 %v61_v20  ;;  %120 = vmatpush.xpose.msra.mxu1 %v62_v21 }
  0x39   :  { %166 = vmatpush.xpose.msra.mxu2 %v59_v22  ;;  %182 = vmatpush.xpose.msra.mxu3 %v60_v23 }
  0x3a   :  { %98 = vmatpush.xpose.msra.mxu0 %v59_v22  ;;  %121 = vmatpush.xpose.msra.mxu1 %v60_v23 }
  0x3d   :  { %167 = vmatpush.xpose.msra.mxu2 %v57_v24  ;;  %183 = vmatpush.xpose.msra.mxu3 %v58_v25 }
  0x3e   :  { %99 = vmatpush.xpose.msra.mxu0 %v57_v24  ;;  %122 = vmatpush.xpose.msra.mxu1 %v58_v25 }
  0x41   :  { %168 = vmatpush.xpose.msra.mxu2 %v55_v26  ;;  %184 = vmatpush.xpose.msra.mxu3 %v56_v27 }
  0x42   :  { %100 = vmatpush.xpose.msra.mxu0 %v55_v26  ;;  %123 = vmatpush.xpose.msra.mxu1 %v56_v27 }
  0x45   :  { %169 = vmatpush.xpose.msra.mxu2 %v53_v28  ;;  %185 = vmatpush.xpose.msra.mxu3 %v54_v29 }
  0x46   :  { %101 = vmatpush.xpose.msra.mxu0 %v53_v28  ;;  %124 = vmatpush.xpose.msra.mxu1 %v54_v29 }
  0x49   :  { %170 = vmatpush.xpose.msra.mxu2 %v51_v30  ;;  %186 = vmatpush.xpose.msra.mxu3 %v52_v31 }
  0x4a   :  { %102 = vmatpush.xpose.msra.mxu0 %v51_v30  ;;  %125 = vmatpush.xpose.msra.mxu1 %v52_v31 }
  0x4c   :  { %106 = vmatmul.f32.vlgmr.msra.gmra.mxu2 %v49_v32  ;;  %129 = vmatmul.f32.vlgmr.msra.gmra.mxu3 %v50_v33 }
  0x4d   :  { %103 = vmatmul.f32.vlgmr.msra.gmra.mxu0 %v47_v34  ;;  %126 = vmatmul.f32.vlgmr.msra.gmra.mxu1 %v48_v35 }
  0xca   :  { %v104_v37 = vpop.f32.mrf.mxu0  ;;  %v127_v38 = vpop.f32.mrf.mxu1 }
  0xcb   :  { %v105_v39 = vadd.f32 %v194_v36, %v104_v37 }
  0xcd   :  { %v128_v40 = vadd.f32 %v127_v38, %v105_v39 }
  0xcf   :  { %v107_v41 = vpop.f32.mrf.mxu2  ;;  %133 = vst [vmem:[#allocation7] sm:$0xff] %v128_v40  ;;  %v130_v42 = vpop.f32.mrf.mxu3 }
  0xd0   :  { %v108_v43 = vadd.f32 %v194_v36, %v107_v41 }
  0xd2   :  { %v131_v44 = vadd.f32 %v130_v42, %v108_v43 }
  0xd4   :  { %134 = vst [vmem:[#allocation7 + $0x8] sm:$0xff] %v131_v44 }
  0xd5   :  { %147 = dma.vmem_to_hbm [thread:$0]  %s140_s25, 256, %s142_s28, [#allocation4], %s278_s29, %s278_s29, %s279_s2  }
  0xd6   :  { %271 = dma.done.wait [#allocation4], 256  }
  0xd7   :  { %272 = vsyncadd [#allocation4], 4294967040 }
  0xd8   :  { %152 = vsyncpa [#allocation3], 1 }
  0xd9   :  { %153 = vsyncpa [#allocation6], 1 }
  0xda   :  { %154 = vsyncpa [#allocation4], 1 }

</bundles_post_ra>
